<compile_context>
chip_gen: v5e
topology: v5e:2x2
jax: 0.10.0
libtpu: 0.0.40
codegen_flags: <defaults>
</compile_context>

<pallas_src>
import functools

import jax
import jax.numpy as jnp
from jax import lax
from jax.experimental import pallas as pl
from jax.experimental.pallas import tpu as pltpu


def _lstm_tagger_kernel(embeds_ref, wih_ref, whh_ref, b_ref, wout_ref, bout_ref,
                        out_ref, *, T, BB, H):
    # Hoisted input projection: one (T*BB, E) @ (E, 4H) MXU matmul + bias. Kept as a
    # value (a few vregs) instead of a VMEM scratch -> no store/reload.
    xg = (jnp.dot(embeds_ref[...], wih_ref[...],
                  preferred_element_type=jnp.float32)
          + b_ref[...])                                           # (T*BB, 4H)

    whh = whh_ref[...]                                            # (H, 4H)
    h = jnp.zeros((BB, H), jnp.float32)
    c = jnp.zeros((BB, H), jnp.float32)
    hs = []

    # Static unroll over T: only the h-dependent matmul stays on the serial chain;
    # per-step hiddens stay in registers.
    for t in range(T):
        gates = xg[t * BB:(t + 1) * BB, :] + jnp.dot(
            h, whh, preferred_element_type=jnp.float32)           # (BB, 4H)  i,f,g,o
        sig = jax.nn.sigmoid(gates)                               # EUP push 1 (full vreg)
        i_g = sig[:, 0 * H:1 * H]
        f_g = sig[:, 1 * H:2 * H]
        o_g = sig[:, 3 * H:4 * H]
        g_g = jnp.tanh(gates[:, 2 * H:3 * H])                     # EUP push 2
        c = f_g * c + i_g * g_g
        h = o_g * jnp.tanh(c)                                     # EUP push 3
        hs.append(h)

    hs_all = jnp.concatenate(hs, axis=0)                          # (T*BB, H), time-major

    # hidden2tag on a lane-dense (128-padded) tag axis. Padded bias columns are
    # -1e30, so they neither win the max nor contribute to the exp-sum.
    tag_space = (jnp.dot(hs_all, wout_ref[...],
                         preferred_element_type=jnp.float32)
                 + bout_ref[...])                                  # (T*BB, TAG_PAD)
    m = jnp.max(tag_space, axis=1, keepdims=True)
    z = tag_space - m
    lse = jnp.log(jnp.sum(jnp.exp(z), axis=1, keepdims=True))
    out_ref[...] = z - lse


def lstm_tagger_batched(sents, emb_table, w_ih, w_hh, b_ih, b_hh, w_out, b_out,
                        *, batch_block=8):
    """LSTMTagger forward for a batch of same-length sentences.

    Each sentence is processed independently -- identical numerics to running the
    PyTorch module once per sentence. sents: int32 (B, T) -> (B, T, Tag)."""
    B, T = sents.shape
    E = emb_table.shape[1]
    H = w_hh.shape[1]
    Tag = w_out.shape[0]
    TAG_PAD = pl.cdiv(Tag, 128) * 128

    BB = min(batch_block, B)
    pad = (-B) % BB
    if pad:
        sents = jnp.concatenate([sents, jnp.zeros((pad, T), sents.dtype)], axis=0)
    Bp = B + pad
    num_bb = Bp // BB

    # Glue: embedding gather + time-major re-layout per batch block.
    # TODO(synk): the gather could be folded into the kernel via scalar prefetch +
    # pl.Element row index_map; negligible at these sizes so kept as glue.
    embeds = emb_table[sents].astype(jnp.float32)                 # (Bp, T, E)
    embeds = embeds.reshape(num_bb, BB, T, E).transpose(0, 2, 1, 3)
    embeds = embeds.reshape(num_bb, T * BB, E)                    # time-major blocks

    wih_t = w_ih.T.astype(jnp.float32)                            # (E, 4H)
    whh_t = w_hh.T.astype(jnp.float32)                            # (H, 4H)
    b = (b_ih + b_hh).reshape(1, 4 * H).astype(jnp.float32)       # (1, 4H)

    # Lane-dense tag axis: zero-pad the weight columns, bias padded columns to -1e30.
    wout_t = jnp.zeros((H, TAG_PAD), jnp.float32)
    wout_t = wout_t.at[:, :Tag].set(w_out.T.astype(jnp.float32))  # (H, TAG_PAD)
    bo = jnp.full((1, TAG_PAD), -1e30, jnp.float32)
    bo = bo.at[0, :Tag].set(b_out.astype(jnp.float32))            # (1, TAG_PAD)

    kernel = functools.partial(_lstm_tagger_kernel, T=T, BB=BB, H=H)

    out = pl.pallas_call(
        kernel,
        out_shape=jax.ShapeDtypeStruct((num_bb, T * BB, TAG_PAD), jnp.float32),
        grid=(num_bb,),
        in_specs=[
            pl.BlockSpec((None, T * BB, E), lambda i: (i, 0, 0)),   # embeds block
            pl.BlockSpec((E, 4 * H), lambda i: (0, 0)),             # W_ih^T (resident)
            pl.BlockSpec((H, 4 * H), lambda i: (0, 0)),             # W_hh^T (resident)
            pl.BlockSpec((1, 4 * H), lambda i: (0, 0)),             # bias
            pl.BlockSpec((H, TAG_PAD), lambda i: (0, 0)),           # W_out^T (padded)
            pl.BlockSpec((1, TAG_PAD), lambda i: (0, 0)),           # b_out (padded)
        ],
        out_specs=pl.BlockSpec((None, T * BB, TAG_PAD), lambda i: (i, 0, 0)),
        compiler_params=pltpu.CompilerParams(
            dimension_semantics=("parallel",)),   # shard batch blocks across v7x's 2 TCs
    )(embeds, wih_t, whh_t, b, wout_t, bo)

    out = out.reshape(num_bb, T, BB, TAG_PAD).transpose(0, 2, 1, 3)
    out = out.reshape(Bp, T, TAG_PAD)[:B, :, :Tag]
    return out


def lstm_tagger(sent, emb_table, w_ih, w_hh, b_ih, b_hh, w_out, b_out):
    """Exact single-sentence forward matching the PyTorch module: (T,) ids -> (T, Tag)."""
    return lstm_tagger_batched(sent[None], emb_table, w_ih, w_hh, b_ih, b_hh,
                               w_out, b_out)[0]


def lstm_tagger_reference(sent, emb_table, w_ih, w_hh, b_ih, b_hh, w_out, b_out):
    """Pure-JAX reference mirroring torch semantics (gate order i,f,g,o)."""
    H = w_hh.shape[1]
    embeds = emb_table[sent]
    b = b_ih + b_hh

    def step(carry, x):
        h, c = carry
        gates = x @ w_ih.T + h @ w_hh.T + b
        i_g = jax.nn.sigmoid(gates[0 * H:1 * H])
        f_g = jax.nn.sigmoid(gates[1 * H:2 * H])
        g_g = jnp.tanh(gates[2 * H:3 * H])
        o_g = jax.nn.sigmoid(gates[3 * H:4 * H])
        c = f_g * c + i_g * g_g
        h = o_g * jnp.tanh(c)
        return (h, c), h

    (_, _), hs = lax.scan(step, (jnp.zeros(H), jnp.zeros(H)), embeds)
    tag_space = hs @ w_out.T + b_out
    return jax.nn.log_softmax(tag_space, axis=1)


if __name__ == "__main__":
    vocab_size = 50
    embedding_dim = 32
    hidden_dim = 32
    tagset_size = 8
    seq_len = 8
    batch = 16          # 2 batch blocks of 8 -> exercises the parallel grid axis

    key = jax.random.PRNGKey(0)
    ks = jax.random.split(key, 8)
    sents = jax.random.randint(ks[0], (batch, seq_len), 0, vocab_size, dtype=jnp.int32)
    emb_table = jax.random.normal(ks[1], (vocab_size, embedding_dim), jnp.float32) * 0.1
    w_ih = jax.random.normal(ks[2], (4 * hidden_dim, embedding_dim), jnp.float32) * 0.1
    w_hh = jax.random.normal(ks[3], (4 * hidden_dim, hidden_dim), jnp.float32) * 0.1
    b_ih = jax.random.normal(ks[4], (4 * hidden_dim,), jnp.float32) * 0.1
    b_hh = jax.random.normal(ks[5], (4 * hidden_dim,), jnp.float32) * 0.1
    w_out = jax.random.normal(ks[6], (tagset_size, hidden_dim), jnp.float32) * 0.1
    b_out = jax.random.normal(ks[7], (tagset_size,), jnp.float32) * 0.1

    # Batched kernel run.
    out = lstm_tagger_batched(sents, emb_table, w_ih, w_hh, b_ih, b_hh, w_out, b_out)
    out = jax.block_until_ready(out)
    assert out.shape == (batch, seq_len, tagset_size)

    # Per-sentence pure-JAX reference (PyTorch semantics), applied to every sentence.
    ref = jax.vmap(lambda s: lstm_tagger_reference(
        s, emb_table, w_ih, w_hh, b_ih, b_hh, w_out, b_out))(sents)
    assert jnp.allclose(out, ref, atol=1e-4, rtol=1e-4), "batched mismatch vs reference"

    # Single-sentence path (original module signature) also matches.
    single = lstm_tagger(sents[0], emb_table, w_ih, w_hh, b_ih, b_hh, w_out, b_out)
    single = jax.block_until_ready(single)
    assert single.shape == (seq_len, tagset_size)
    assert jnp.allclose(single, ref[0], atol=1e-4, rtol=1e-4), "single-sentence mismatch"

    print("KERNEL_OK")
</pallas_src>

<mosaic_0001>
module attributes {stable_mosaic.version = 11 : i64} {
  func.func @_lstm_tagger_kernel(%arg0: i32, %arg1: memref<1x64x32xf32, #tpu.memory_space<vmem>>, %arg2: memref<32x128xf32, #tpu.memory_space<vmem>>, %arg3: memref<32x128xf32, #tpu.memory_space<vmem>>, %arg4: memref<1x128xf32, #tpu.memory_space<vmem>>, %arg5: memref<32x128xf32, #tpu.memory_space<vmem>>, %arg6: memref<1x128xf32, #tpu.memory_space<vmem>>, %arg7: memref<1x64x128xf32, #tpu.memory_space<vmem>>) attributes {dimension_semantics = [#tpu.dimension_semantics<parallel>], iteration_bounds = array<i64: 2>, scalar_prefetch = 0 : i64, scratch_operands = 0 : i64, tpu.core_type = #tpu.core_type<tc>, window_params = [{transform_indices = @transform_0, window_bounds = array<i64: 1, 64, 32>}, {pipeline_mode = #tpu.pipeline_mode<synchronous>, transform_indices = @transform_1, window_bounds = array<i64: 32, 128>}, {pipeline_mode = #tpu.pipeline_mode<synchronous>, transform_indices = @transform_2, window_bounds = array<i64: 32, 128>}, {pipeline_mode = #tpu.pipeline_mode<synchronous>, transform_indices = @transform_3, window_bounds = array<i64: 1, 128>}, {pipeline_mode = #tpu.pipeline_mode<synchronous>, transform_indices = @transform_4, window_bounds = array<i64: 32, 128>}, {pipeline_mode = #tpu.pipeline_mode<synchronous>, transform_indices = @transform_5, window_bounds = array<i64: 1, 128>}, {transform_indices = @transform_6, window_bounds = array<i64: 1, 64, 128>}]} {
    %c0 = arith.constant 0 : index
    %c0_0 = arith.constant 0 : index
    %c0_1 = arith.constant 0 : index
    %0 = vector.load %arg1[%c0, %c0_0, %c0_1] : memref<1x64x32xf32, #tpu.memory_space<vmem>>, vector<1x64x32xf32>
    %1 = vector.shape_cast %0 : vector<1x64x32xf32> to vector<64x32xf32>
    %c0_2 = arith.constant 0 : index
    %c0_3 = arith.constant 0 : index
    %2 = vector.load %arg2[%c0_2, %c0_3] : memref<32x128xf32, #tpu.memory_space<vmem>>, vector<32x128xf32>
    %cst = arith.constant dense<0.000000e+00> : vector<64x128xf32>
    %3 = tpu.matmul %1, %2, %cst {dimension_numbers = #tpu.dot_dimension_numbers<[1], [0], [0], [1], [0, 0, 1, 1], [], []>} : vector<64x32xf32>, vector<32x128xf32>, vector<64x128xf32> -> vector<64x128xf32>
    %c0_4 = arith.constant 0 : index
    %c0_5 = arith.constant 0 : index
    %4 = vector.load %arg4[%c0_4, %c0_5] : memref<1x128xf32, #tpu.memory_space<vmem>>, vector<1x128xf32>
    %5 = vector.broadcast %4 : vector<1x128xf32> to vector<64x128xf32>
    %6 = arith.addf %3, %5 : vector<64x128xf32>
    %c0_6 = arith.constant 0 : index
    %c0_7 = arith.constant 0 : index
    %7 = vector.load %arg3[%c0_6, %c0_7] : memref<32x128xf32, #tpu.memory_space<vmem>>, vector<32x128xf32>
    %cst_8 = arith.constant 0.000000e+00 : f32
    %8 = vector.broadcast %cst_8 : f32 to vector<8x32xf32>
    %cst_9 = arith.constant 0.000000e+00 : f32
    %9 = vector.broadcast %cst_9 : f32 to vector<8x32xf32>
    %10 = vector.extract_strided_slice %6 {offsets = [0, 0], sizes = [8, 128], strides = [1, 1]} : vector<64x128xf32> to vector<8x128xf32>
    %cst_10 = arith.constant dense<0.000000e+00> : vector<8x128xf32>
    %11 = tpu.matmul %8, %7, %cst_10 {dimension_numbers = #tpu.dot_dimension_numbers<[1], [0], [0], [1], [0, 0, 1, 1], [], []>} : vector<8x32xf32>, vector<32x128xf32>, vector<8x128xf32> -> vector<8x128xf32>
    %12 = arith.addf %10, %11 : vector<8x128xf32>
    %13 = arith.negf %12 : vector<8x128xf32>
    %14 = math.exp %13 : vector<8x128xf32>
    %cst_11 = arith.constant 1.000000e+00 : f32
    %15 = vector.broadcast %cst_11 : f32 to vector<8x128xf32>
    %16 = arith.addf %15, %14 : vector<8x128xf32>
    %17 = arith.divf %15, %16 : vector<8x128xf32>
    %18 = vector.extract_strided_slice %17 {offsets = [0, 0], sizes = [8, 32], strides = [1, 1]} : vector<8x128xf32> to vector<8x32xf32>
    %19 = vector.extract_strided_slice %17 {offsets = [0, 32], sizes = [8, 32], strides = [1, 1]} : vector<8x128xf32> to vector<8x32xf32>
    %20 = vector.extract_strided_slice %17 {offsets = [0, 96], sizes = [8, 32], strides = [1, 1]} : vector<8x128xf32> to vector<8x32xf32>
    %21 = vector.extract_strided_slice %12 {offsets = [0, 64], sizes = [8, 32], strides = [1, 1]} : vector<8x128xf32> to vector<8x32xf32>
    %22 = math.tanh %21 : vector<8x32xf32>
    %23 = arith.mulf %19, %9 : vector<8x32xf32>
    %24 = arith.mulf %18, %22 : vector<8x32xf32>
    %25 = arith.addf %23, %24 : vector<8x32xf32>
    %26 = math.tanh %25 : vector<8x32xf32>
    %27 = arith.mulf %20, %26 : vector<8x32xf32>
    %28 = vector.extract_strided_slice %6 {offsets = [8, 0], sizes = [8, 128], strides = [1, 1]} : vector<64x128xf32> to vector<8x128xf32>
    %cst_12 = arith.constant dense<0.000000e+00> : vector<8x128xf32>
    %29 = tpu.matmul %27, %7, %cst_12 {dimension_numbers = #tpu.dot_dimension_numbers<[1], [0], [0], [1], [0, 0, 1, 1], [], []>} : vector<8x32xf32>, vector<32x128xf32>, vector<8x128xf32> -> vector<8x128xf32>
    %30 = arith.addf %28, %29 : vector<8x128xf32>
    %31 = arith.negf %30 : vector<8x128xf32>
    %32 = math.exp %31 : vector<8x128xf32>
    %cst_13 = arith.constant 1.000000e+00 : f32
    %33 = vector.broadcast %cst_13 : f32 to vector<8x128xf32>
    %34 = arith.addf %33, %32 : vector<8x128xf32>
    %35 = arith.divf %33, %34 : vector<8x128xf32>
    %36 = vector.extract_strided_slice %35 {offsets = [0, 0], sizes = [8, 32], strides = [1, 1]} : vector<8x128xf32> to vector<8x32xf32>
    %37 = vector.extract_strided_slice %35 {offsets = [0, 32], sizes = [8, 32], strides = [1, 1]} : vector<8x128xf32> to vector<8x32xf32>
    %38 = vector.extract_strided_slice %35 {offsets = [0, 96], sizes = [8, 32], strides = [1, 1]} : vector<8x128xf32> to vector<8x32xf32>
    %39 = vector.extract_strided_slice %30 {offsets = [0, 64], sizes = [8, 32], strides = [1, 1]} : vector<8x128xf32> to vector<8x32xf32>
    %40 = math.tanh %39 : vector<8x32xf32>
    %41 = arith.mulf %37, %25 : vector<8x32xf32>
    %42 = arith.mulf %36, %40 : vector<8x32xf32>
    %43 = arith.addf %41, %42 : vector<8x32xf32>
    %44 = math.tanh %43 : vector<8x32xf32>
    %45 = arith.mulf %38, %44 : vector<8x32xf32>
    %46 = vector.extract_strided_slice %6 {offsets = [16, 0], sizes = [8, 128], strides = [1, 1]} : vector<64x128xf32> to vector<8x128xf32>
    %cst_14 = arith.constant dense<0.000000e+00> : vector<8x128xf32>
    %47 = tpu.matmul %45, %7, %cst_14 {dimension_numbers = #tpu.dot_dimension_numbers<[1], [0], [0], [1], [0, 0, 1, 1], [], []>} : vector<8x32xf32>, vector<32x128xf32>, vector<8x128xf32> -> vector<8x128xf32>
    %48 = arith.addf %46, %47 : vector<8x128xf32>
    %49 = arith.negf %48 : vector<8x128xf32>
    %50 = math.exp %49 : vector<8x128xf32>
    %cst_15 = arith.constant 1.000000e+00 : f32
    %51 = vector.broadcast %cst_15 : f32 to vector<8x128xf32>
    %52 = arith.addf %51, %50 : vector<8x128xf32>
    %53 = arith.divf %51, %52 : vector<8x128xf32>
    %54 = vector.extract_strided_slice %53 {offsets = [0, 0], sizes = [8, 32], strides = [1, 1]} : vector<8x128xf32> to vector<8x32xf32>
    %55 = vector.extract_strided_slice %53 {offsets = [0, 32], sizes = [8, 32], strides = [1, 1]} : vector<8x128xf32> to vector<8x32xf32>
    %56 = vector.extract_strided_slice %53 {offsets = [0, 96], sizes = [8, 32], strides = [1, 1]} : vector<8x128xf32> to vector<8x32xf32>
    %57 = vector.extract_strided_slice %48 {offsets = [0, 64], sizes = [8, 32], strides = [1, 1]} : vector<8x128xf32> to vector<8x32xf32>
    %58 = math.tanh %57 : vector<8x32xf32>
    %59 = arith.mulf %55, %43 : vector<8x32xf32>
    %60 = arith.mulf %54, %58 : vector<8x32xf32>
    %61 = arith.addf %59, %60 : vector<8x32xf32>
    %62 = math.tanh %61 : vector<8x32xf32>
    %63 = arith.mulf %56, %62 : vector<8x32xf32>
    %64 = vector.extract_strided_slice %6 {offsets = [24, 0], sizes = [8, 128], strides = [1, 1]} : vector<64x128xf32> to vector<8x128xf32>
    %cst_16 = arith.constant dense<0.000000e+00> : vector<8x128xf32>
    %65 = tpu.matmul %63, %7, %cst_16 {dimension_numbers = #tpu.dot_dimension_numbers<[1], [0], [0], [1], [0, 0, 1, 1], [], []>} : vector<8x32xf32>, vector<32x128xf32>, vector<8x128xf32> -> vector<8x128xf32>
    %66 = arith.addf %64, %65 : vector<8x128xf32>
    %67 = arith.negf %66 : vector<8x128xf32>
    %68 = math.exp %67 : vector<8x128xf32>
    %cst_17 = arith.constant 1.000000e+00 : f32
    %69 = vector.broadcast %cst_17 : f32 to vector<8x128xf32>
    %70 = arith.addf %69, %68 : vector<8x128xf32>
    %71 = arith.divf %69, %70 : vector<8x128xf32>
    %72 = vector.extract_strided_slice %71 {offsets = [0, 0], sizes = [8, 32], strides = [1, 1]} : vector<8x128xf32> to vector<8x32xf32>
    %73 = vector.extract_strided_slice %71 {offsets = [0, 32], sizes = [8, 32], strides = [1, 1]} : vector<8x128xf32> to vector<8x32xf32>
    %74 = vector.extract_strided_slice %71 {offsets = [0, 96], sizes = [8, 32], strides = [1, 1]} : vector<8x128xf32> to vector<8x32xf32>
    %75 = vector.extract_strided_slice %66 {offsets = [0, 64], sizes = [8, 32], strides = [1, 1]} : vector<8x128xf32> to vector<8x32xf32>
    %76 = math.tanh %75 : vector<8x32xf32>
    %77 = arith.mulf %73, %61 : vector<8x32xf32>
    %78 = arith.mulf %72, %76 : vector<8x32xf32>
    %79 = arith.addf %77, %78 : vector<8x32xf32>
    %80 = math.tanh %79 : vector<8x32xf32>
    %81 = arith.mulf %74, %80 : vector<8x32xf32>
    %82 = vector.extract_strided_slice %6 {offsets = [32, 0], sizes = [8, 128], strides = [1, 1]} : vector<64x128xf32> to vector<8x128xf32>
    %cst_18 = arith.constant dense<0.000000e+00> : vector<8x128xf32>
    %83 = tpu.matmul %81, %7, %cst_18 {dimension_numbers = #tpu.dot_dimension_numbers<[1], [0], [0], [1], [0, 0, 1, 1], [], []>} : vector<8x32xf32>, vector<32x128xf32>, vector<8x128xf32> -> vector<8x128xf32>
    %84 = arith.addf %82, %83 : vector<8x128xf32>
    %85 = arith.negf %84 : vector<8x128xf32>
    %86 = math.exp %85 : vector<8x128xf32>
    %cst_19 = arith.constant 1.000000e+00 : f32
    %87 = vector.broadcast %cst_19 : f32 to vector<8x128xf32>
    %88 = arith.addf %87, %86 : vector<8x128xf32>
    %89 = arith.divf %87, %88 : vector<8x128xf32>
    %90 = vector.extract_strided_slice %89 {offsets = [0, 0], sizes = [8, 32], strides = [1, 1]} : vector<8x128xf32> to vector<8x32xf32>
    %91 = vector.extract_strided_slice %89 {offsets = [0, 32], sizes = [8, 32], strides = [1, 1]} : vector<8x128xf32> to vector<8x32xf32>
    %92 = vector.extract_strided_slice %89 {offsets = [0, 96], sizes = [8, 32], strides = [1, 1]} : vector<8x128xf32> to vector<8x32xf32>
    %93 = vector.extract_strided_slice %84 {offsets = [0, 64], sizes = [8, 32], strides = [1, 1]} : vector<8x128xf32> to vector<8x32xf32>
    %94 = math.tanh %93 : vector<8x32xf32>
    %95 = arith.mulf %91, %79 : vector<8x32xf32>
    %96 = arith.mulf %90, %94 : vector<8x32xf32>
    %97 = arith.addf %95, %96 : vector<8x32xf32>
    %98 = math.tanh %97 : vector<8x32xf32>
    %99 = arith.mulf %92, %98 : vector<8x32xf32>
    %100 = vector.extract_strided_slice %6 {offsets = [40, 0], sizes = [8, 128], strides = [1, 1]} : vector<64x128xf32> to vector<8x128xf32>
    %cst_20 = arith.constant dense<0.000000e+00> : vector<8x128xf32>
    %101 = tpu.matmul %99, %7, %cst_20 {dimension_numbers = #tpu.dot_dimension_numbers<[1], [0], [0], [1], [0, 0, 1, 1], [], []>} : vector<8x32xf32>, vector<32x128xf32>, vector<8x128xf32> -> vector<8x128xf32>
    %102 = arith.addf %100, %101 : vector<8x128xf32>
    %103 = arith.negf %102 : vector<8x128xf32>
    %104 = math.exp %103 : vector<8x128xf32>
    %cst_21 = arith.constant 1.000000e+00 : f32
    %105 = vector.broadcast %cst_21 : f32 to vector<8x128xf32>
    %106 = arith.addf %105, %104 : vector<8x128xf32>
    %107 = arith.divf %105, %106 : vector<8x128xf32>
    %108 = vector.extract_strided_slice %107 {offsets = [0, 0], sizes = [8, 32], strides = [1, 1]} : vector<8x128xf32> to vector<8x32xf32>
    %109 = vector.extract_strided_slice %107 {offsets = [0, 32], sizes = [8, 32], strides = [1, 1]} : vector<8x128xf32> to vector<8x32xf32>
    %110 = vector.extract_strided_slice %107 {offsets = [0, 96], sizes = [8, 32], strides = [1, 1]} : vector<8x128xf32> to vector<8x32xf32>
    %111 = vector.extract_strided_slice %102 {offsets = [0, 64], sizes = [8, 32], strides = [1, 1]} : vector<8x128xf32> to vector<8x32xf32>
    %112 = math.tanh %111 : vector<8x32xf32>
    %113 = arith.mulf %109, %97 : vector<8x32xf32>
    %114 = arith.mulf %108, %112 : vector<8x32xf32>
    %115 = arith.addf %113, %114 : vector<8x32xf32>
    %116 = math.tanh %115 : vector<8x32xf32>
    %117 = arith.mulf %110, %116 : vector<8x32xf32>
    %118 = vector.extract_strided_slice %6 {offsets = [48, 0], sizes = [8, 128], strides = [1, 1]} : vector<64x128xf32> to vector<8x128xf32>
    %cst_22 = arith.constant dense<0.000000e+00> : vector<8x128xf32>
    %119 = tpu.matmul %117, %7, %cst_22 {dimension_numbers = #tpu.dot_dimension_numbers<[1], [0], [0], [1], [0, 0, 1, 1], [], []>} : vector<8x32xf32>, vector<32x128xf32>, vector<8x128xf32> -> vector<8x128xf32>
    %120 = arith.addf %118, %119 : vector<8x128xf32>
    %121 = arith.negf %120 : vector<8x128xf32>
    %122 = math.exp %121 : vector<8x128xf32>
    %cst_23 = arith.constant 1.000000e+00 : f32
    %123 = vector.broadcast %cst_23 : f32 to vector<8x128xf32>
    %124 = arith.addf %123, %122 : vector<8x128xf32>
    %125 = arith.divf %123, %124 : vector<8x128xf32>
    %126 = vector.extract_strided_slice %125 {offsets = [0, 0], sizes = [8, 32], strides = [1, 1]} : vector<8x128xf32> to vector<8x32xf32>
    %127 = vector.extract_strided_slice %125 {offsets = [0, 32], sizes = [8, 32], strides = [1, 1]} : vector<8x128xf32> to vector<8x32xf32>
    %128 = vector.extract_strided_slice %125 {offsets = [0, 96], sizes = [8, 32], strides = [1, 1]} : vector<8x128xf32> to vector<8x32xf32>
    %129 = vector.extract_strided_slice %120 {offsets = [0, 64], sizes = [8, 32], strides = [1, 1]} : vector<8x128xf32> to vector<8x32xf32>
    %130 = math.tanh %129 : vector<8x32xf32>
    %131 = arith.mulf %127, %115 : vector<8x32xf32>
    %132 = arith.mulf %126, %130 : vector<8x32xf32>
    %133 = arith.addf %131, %132 : vector<8x32xf32>
    %134 = math.tanh %133 : vector<8x32xf32>
    %135 = arith.mulf %128, %134 : vector<8x32xf32>
    %136 = vector.extract_strided_slice %6 {offsets = [56, 0], sizes = [8, 128], strides = [1, 1]} : vector<64x128xf32> to vector<8x128xf32>
    %cst_24 = arith.constant dense<0.000000e+00> : vector<8x128xf32>
    %137 = tpu.matmul %135, %7, %cst_24 {dimension_numbers = #tpu.dot_dimension_numbers<[1], [0], [0], [1], [0, 0, 1, 1], [], []>} : vector<8x32xf32>, vector<32x128xf32>, vector<8x128xf32> -> vector<8x128xf32>
    %138 = arith.addf %136, %137 : vector<8x128xf32>
    %139 = arith.negf %138 : vector<8x128xf32>
    %140 = math.exp %139 : vector<8x128xf32>
    %cst_25 = arith.constant 1.000000e+00 : f32
    %141 = vector.broadcast %cst_25 : f32 to vector<8x128xf32>
    %142 = arith.addf %141, %140 : vector<8x128xf32>
    %143 = arith.divf %141, %142 : vector<8x128xf32>
    %144 = vector.extract_strided_slice %143 {offsets = [0, 0], sizes = [8, 32], strides = [1, 1]} : vector<8x128xf32> to vector<8x32xf32>
    %145 = vector.extract_strided_slice %143 {offsets = [0, 32], sizes = [8, 32], strides = [1, 1]} : vector<8x128xf32> to vector<8x32xf32>
    %146 = vector.extract_strided_slice %143 {offsets = [0, 96], sizes = [8, 32], strides = [1, 1]} : vector<8x128xf32> to vector<8x32xf32>
    %147 = vector.extract_strided_slice %138 {offsets = [0, 64], sizes = [8, 32], strides = [1, 1]} : vector<8x128xf32> to vector<8x32xf32>
    %148 = math.tanh %147 : vector<8x32xf32>
    %149 = arith.mulf %145, %133 : vector<8x32xf32>
    %150 = arith.mulf %144, %148 : vector<8x32xf32>
    %151 = arith.addf %149, %150 : vector<8x32xf32>
    %152 = math.tanh %151 : vector<8x32xf32>
    %153 = arith.mulf %146, %152 : vector<8x32xf32>
    %154 = tpu.concatenate %27, %45, %63, %81, %99, %117, %135, %153 in 0 : vector<8x32xf32>, vector<8x32xf32>, vector<8x32xf32>, vector<8x32xf32>, vector<8x32xf32>, vector<8x32xf32>, vector<8x32xf32>, vector<8x32xf32> -> vector<64x32xf32>
    %c0_26 = arith.constant 0 : index
    %c0_27 = arith.constant 0 : index
    %155 = vector.load %arg5[%c0_26, %c0_27] : memref<32x128xf32, #tpu.memory_space<vmem>>, vector<32x128xf32>
    %cst_28 = arith.constant dense<0.000000e+00> : vector<64x128xf32>
    %156 = tpu.matmul %154, %155, %cst_28 {dimension_numbers = #tpu.dot_dimension_numbers<[1], [0], [0], [1], [0, 0, 1, 1], [], []>} : vector<64x32xf32>, vector<32x128xf32>, vector<64x128xf32> -> vector<64x128xf32>
    %c0_29 = arith.constant 0 : index
    %c0_30 = arith.constant 0 : index
    %157 = vector.load %arg6[%c0_29, %c0_30] : memref<1x128xf32, #tpu.memory_space<vmem>>, vector<1x128xf32>
    %158 = vector.broadcast %157 : vector<1x128xf32> to vector<64x128xf32>
    %159 = arith.addf %156, %158 : vector<64x128xf32>
    %cst_31 = arith.constant dense<0xFF800000> : vector<64xf32>
    %160 = vector.multi_reduction <maximumf>, %159, %cst_31 [1] : vector<64x128xf32> to vector<64xf32>
    %161 = vector.shape_cast %160 : vector<64xf32> to vector<64x1xf32>
    %162 = vector.broadcast %161 : vector<64x1xf32> to vector<64x128xf32>
    %163 = arith.subf %159, %162 : vector<64x128xf32>
    %164 = math.exp %163 : vector<64x128xf32>
    %cst_32 = arith.constant dense<0.000000e+00> : vector<64xf32>
    %165 = vector.multi_reduction <add>, %164, %cst_32 [1] : vector<64x128xf32> to vector<64xf32>
    %166 = vector.shape_cast %165 : vector<64xf32> to vector<64x1xf32>
    %167 = math.log %166 : vector<64x1xf32>
    %168 = vector.broadcast %167 : vector<64x1xf32> to vector<64x128xf32>
    %169 = arith.subf %163, %168 : vector<64x128xf32>
    %c0_33 = arith.constant 0 : index
    %c0_34 = arith.constant 0 : index
    %c0_35 = arith.constant 0 : index
    %170 = vector.load %arg7[%c0_33, %c0_34, %c0_35] : memref<1x64x128xf32, #tpu.memory_space<vmem>>, vector<1x64x128xf32>
    %171 = vector.shape_cast %170 : vector<1x64x128xf32> to vector<64x128xf32>
    %172 = vector.shape_cast %169 : vector<64x128xf32> to vector<1x64x128xf32>
    tpu.vector_store %arg7[%c0_33, %c0_34, %c0_35], %172 {strides = array<i32>} : memref<1x64x128xf32, #tpu.memory_space<vmem>>, vector<1x64x128xf32>,
    return
  }
  func.func @transform_0(%arg0: i32) -> (i32, i32, i32) {
    %c0_i32 = arith.constant 0 : i32
    %c0_i32_0 = arith.constant 0 : i32
    %c0_i32_1 = arith.constant 0 : i32
    return %arg0, %c0_i32, %c0_i32_0 : i32, i32, i32
  }
  func.func @transform_1(%arg0: i32) -> (i32, i32) {
    %c0_i32 = arith.constant 0 : i32
    %c0_i32_0 = arith.constant 0 : i32
    %c0_i32_1 = arith.constant 0 : i32
    return %c0_i32, %c0_i32_0 : i32, i32
  }
  func.func @transform_2(%arg0: i32) -> (i32, i32) {
    %c0_i32 = arith.constant 0 : i32
    %c0_i32_0 = arith.constant 0 : i32
    %c0_i32_1 = arith.constant 0 : i32
    return %c0_i32, %c0_i32_0 : i32, i32
  }
  func.func @transform_3(%arg0: i32) -> (i32, i32) {
    %c0_i32 = arith.constant 0 : i32
    %c0_i32_0 = arith.constant 0 : i32
    %c0_i32_1 = arith.constant 0 : i32
    return %c0_i32, %c0_i32_0 : i32, i32
  }
  func.func @transform_4(%arg0: i32) -> (i32, i32) {
    %c0_i32 = arith.constant 0 : i32
    %c0_i32_0 = arith.constant 0 : i32
    %c0_i32_1 = arith.constant 0 : i32
    return %c0_i32, %c0_i32_0 : i32, i32
  }
  func.func @transform_5(%arg0: i32) -> (i32, i32) {
    %c0_i32 = arith.constant 0 : i32
    %c0_i32_0 = arith.constant 0 : i32
    %c0_i32_1 = arith.constant 0 : i32
    return %c0_i32, %c0_i32_0 : i32, i32
  }
  func.func @transform_6(%arg0: i32) -> (i32, i32, i32) {
    %c0_i32 = arith.constant 0 : i32
    %c0_i32_0 = arith.constant 0 : i32
    %c0_i32_1 = arith.constant 0 : i32
    return %arg0, %c0_i32, %c0_i32_0 : i32, i32, i32
  }
}

</mosaic_0001>

<bundles_post_ra>
// kernel: tpu_custom_call.1
= control target key start
LH: loop header
LB: loop body
LE: loop exit
PB: predicated region body
PF: predicated region fallthrough
CT: control target
= control target key end

     0   :  { %11 = vsyncpa [#allocation3], 0  ;;  %s1650_s0 = inlined_call_operand.vmem [shape: f32[2,64,32], index: 0, kind: input, shape index: {}]   ;;  %s1651_s1 = inlined_call_operand.vmem [shape: f32[32,128], index: 1, kind: input, shape index: {}]   ;;  %s1652_s2 = inlined_call_operand.vmem [shape: f32[32,128], index: 2, kind: input, shape index: {}]   ;;  %s1653_s3 = inlined_call_operand.vmem [shape: f32[1,128], index: 3, kind: input, shape index: {}]   ;;  %s1654_s4 = inlined_call_operand.vmem [shape: f32[32,128], index: 4, kind: input, shape index: {}]   ;;  %s1655_s5 = inlined_call_operand.vmem [shape: f32[1,128], index: 5, kind: input, shape index: {}]   ;;  %s1656_s6 = inlined_call_operand.hbm [shape: f32[2,64,128], index: 6, kind: output, shape index: {}]  }
   0x1   :  { %13 = vsyncpa [#allocation3 + $0x1], 0  ;;  %s1357_s21 = smov 0   ;;  %s1359_s22 = smov 0  }
   0x2   :  { %s1361_s23 = smov 0   ;;  %s1363_s24 = smov 0  }
   0x3 LB: > { %s1378_s25 = sadd.s32 4294967295, %s1315_s24   ;;  %s1058_s26 = sadd.s32 4294967294, %s1315_s24   ;;  %s1315_s24 = sphi %s1363_s24, %s1662_s24   ;;  %s1311_s23 = sphi %s1361_s23, %s1661_s23   ;;  %s1307_s22 = sphi %s1359_s22, %s1660_s22   ;;  %s1303_s21 = sphi %s1357_s21, %s1659_s21  }
   0x4   : > { %s1382_s27 = sadd.s32 1, %s1315_s24   ;;  %s157_s28 = sadd.s32 1, %s1311_s23 }
   0x5   : > { %s154_s29 = ssub.s32 %s1315_s24, %s1382_s27  ;;  %p167_p0 = scmp.ne.s32.totalorder %s1311_s23, %s1307_s22 }
   0x6   : > { %p155_p1 = scmp.eq.s32.totalorder %s154_s29, 0  ;;  %p168_p2 = scmp.eq.s32.totalorder %s1378_s25, 1 }
   0x7   : > { %p173_p3 = scmp.ne.s32.totalorder %s1307_s22, %s1303_s21  ;;  %p174_p4 = scmp.eq.s32.totalorder %s1058_s26, 1 }
   0x8   : > { %s1393_s30 = scalar_select %p155_p1, %s1311_s23, %s157_s28  }
   0x9   : > { %p1395_p5 = por %p168_p2, %p167_p0  ;;  %p1399_p6 = por %p174_p4, %p173_p3 }
   0xa   : > { %p1061_p7 = scmp.ge.s32.totalorder %s1315_s24, 1  ;;  %p215_p8 = scmp.lt.s32.totalorder %s1315_s24, 3 }
   0xc   : > { %p216_p9 = pnand %p1061_p7, %p215_p8 }
   0xd   : > { %p245_p10 = scmp.lt.s32.totalorder (!%p216_p9), %s1378_s25, 1  ;;  %s1319_s18 = smov (!%p216_p9), 32  }
   0xe   : > { %219 = sbr.rel (%p216_p9) target bundleno = 5095 (0x13e7), region = 44  ;;  %s242_s14 = sand.u32 (!%p216_p9), 1, %s1307_s22  }
   0xf   : > { %s1062_s15 = sshll.u32 (!%p216_p9), %s242_s14, 6  ;;  %s981_s29 = scalar_lea.sflag (!%p216_p9), [#allocation3], %s242_s14 }
  0x10   : > { %s1603_s16 = scalar_lea.vmem (!%p216_p9), [#allocation2], %s1062_s15 }
  0x11   : > { %s993_s26 = sshll.u32 (!%p216_p9), %s1603_s16, 4  ;;  %s994_s26 = int_to_ptr.vmem [resolvable:$true] %s993_s26 }
  0x13   : > { %v261_v0 = vld [vmem:[%s1651_s1 + $0x18] sm:$0xff]  ;;  %v260_v1 = vld [vmem:[%s1651_s1 + $0x10] sm:$0xff]  ;;  %v259_v3 = vld [vmem:[%s1651_s1 + $0x8] sm:$0xff]  ;;  %s246_s17 = scalar_select %p245_p10, %s1378_s25, 1  ;;  %vm266_vm0 = vcmask 261120   ;;  %v1317_v11 = vmov 0.0  }
  0x14   : > { %1103 = vmatpush.msra.mxu2 %v261_v0  ;;  %v1415_v2 = vld [vmem:[%s1652_s2 + $0x18] sm:$0xff]  ;;  %303 = vmatpush.msra.mxu0 %v261_v0  ;;  %v1426_v4 = vld [vmem:[%s1652_s2 + $0x10] sm:$0xff]  ;;  %v258_v5 = vld [vmem:[%s1651_s1] sm:$0xff] }
  0x15   : > { %477 = vmatpush.msra.mxu3 %v1415_v2  ;;  %540 = vmatpush.msra.mxu1 %v1415_v2  ;;  %s1101_s28 = sshll.u32 %s246_s17, 6  ;;  %v1441_v6 = vld [vmem:[%s1652_s2 + $0x8] sm:$0xff]  ;;  %v1451_v9 = vld [vmem:[%s1652_s2] sm:$0xff]  ;;  %s1318_s17 = smov 64  }
  0x16   : > { %1104 = vmatpush.msra.mxu2 %v260_v1  ;;  %304 = vmatpush.msra.mxu0 %v260_v1  ;;  %s1436_s10 = scalar_lea.vmem %s1650_s0, %s1101_s28  ;;  %v1485_v15 = vld [vmem:[%s1653_s3] ss:$0 sm:$0xff] }
  0x17   : > { %478 = vmatpush.msra.mxu3 %v1426_v4  ;;  %541 = vmatpush.msra.mxu1 %v1426_v4  ;;  %v256_v7 = vld [vmem:[%s1436_s10 + $0x30] sm:$0xff]  ;;  %v250_v8 = vld [vmem:[%s1436_s10] sm:$0xff]  ;;  %v257_v10 = vld [vmem:[%s1436_s10 + $0x38] sm:$0xff] }
  0x18   : > { %1105 = vmatpush.msra.mxu2 %v259_v3  ;;  %305 = vmatpush.msra.mxu0 %v259_v3  ;;  %v251_v41 = vld [vmem:[%s1436_s10 + $0x8] sm:$0xff] }
  0x19   : > { %479 = vmatpush.msra.mxu3 %v1441_v6  ;;  %542 = vmatpush.msra.mxu1 %v1441_v6 }
  0x1a   : > { %1106 = vmatpush.msra.mxu2 %v258_v5  ;;  %306 = vmatpush.msra.mxu0 %v258_v5  ;;  %v252_v5 = vld [vmem:[%s1436_s10 + $0x10] sm:$0xff] }
  0x1b   : > { %1071 = vmatmul.msk.f32.vlgmr.msra.gmra.mxu2 %vm266_vm0, %v256_v7  ;;  %1065 = vmatmul.msk.f32.vlgmr.msra.gmra.mxu0 %vm266_vm0, %v250_v8 }
  0x1c   : > { %351 = vmatpush.msrb.mxu2 %v1415_v2  ;;  %480 = vmatpush.msra.mxu3 %v1451_v9 }
  0x1d   : > { %543 = vmatpush.msra.mxu1 %v1451_v9 }
  0x1e   : > { %666 = vmatpush.msrb.mxu3 %v1415_v2  ;;  %352 = vmatpush.msrb.mxu2 %v1426_v4 }
  0x1f   : > { %729 = vmatpush.msrb.mxu1 %v1415_v2 }
  0x20   : > { %667 = vmatpush.msrb.mxu3 %v1426_v4  ;;  %353 = vmatpush.msrb.mxu2 %v1441_v6 }
  0x21   : > { %730 = vmatpush.msrb.mxu1 %v1426_v4 }
  0x22   : > { %668 = vmatpush.msrb.mxu3 %v1441_v6  ;;  %354 = vmatpush.msrb.mxu2 %v1451_v9 }
  0x23   : > { %731 = vmatpush.msrb.mxu1 %v1441_v6  ;;  %1072 = vmatmul.msk.f32.gmra.mxu2 %vm266_vm0, %v257_v10 }
  0x24   : > { %669 = vmatpush.msrb.mxu3 %v1451_v9  ;;  %414 = vmatpush.msra.mxu2 %v1415_v2 }
  0x25   : > { %732 = vmatpush.msrb.mxu1 %v1451_v9  ;;  %1066 = vmatmul.msk.f32.gmra.mxu0 %vm266_vm0, %v251_v41 }
  0x26   : > { %415 = vmatpush.msra.mxu2 %v1426_v4 }
  0x28   : > { %416 = vmatpush.msra.mxu2 %v1441_v6 }
  0x2a   : > { %417 = vmatpush.msra.mxu2 %v1451_v9 }
  0x2b   : > { %355 = vmatmul.f32.vlgmr.msrb.gmra.mxu2 %v1317_v11 }
  0x2c   : > { %603 = vmatpush.msrb.mxu2 %v1415_v2 }
  0x2d   : > { %1067 = vmatmul.msk.f32.gmra.mxu0 %vm266_vm0, %v252_v5 }
  0x2e   : > { %604 = vmatpush.msrb.mxu2 %v1426_v4 }
  0x30   : > { %605 = vmatpush.msrb.mxu2 %v1441_v6 }
  0x32   : > { %606 = vmatpush.msrb.mxu2 %v1451_v9 }
  0x98   : > { %v308_v14 = vpop.f32.mrf.mxu0 }
  0x99   : > { %v309_v16 = vadd.f32 %v1485_v15, %v308_v14 }
  0x9e   : > { %v1478_v12 = vpop.f32.mrf.mxu2 }
  0xa2   : > { %v311_v43 = vpop.f32.mrf.mxu0 }
  0xa3   : > { %v312_v44 = vadd.f32 %v1485_v15, %v311_v43 }
  0xa6   : > { %v1480_v13 = vpop.f32.mrf.mxu2 }
  0xaa   : > { %v314_v7 = vpop.f32.mrf.mxu0 }
  0xab   : > { %v315_v8 = vadd.f32 %v1485_v15, %v314_v7 }
  0xae   : > { %v356_v17 = vpop.f32.mrf.mxu2 }
  0xaf   : > { %v359_v18 = vadd.f32 %v356_v17, %v309_v16 }
  0xb1   : > { %1157 = vtanh.f32 %v359_v18  ;;  %v1073_v20 = vmul.f32 -1.442695, %v359_v18 }
  0xb3   : > { %1159 = vpow2.f32 %v1073_v20 }
  0xb7   : > { %v1158_v19 = vpop.eup %1157 }
  0xb8   : > { %382 = vrot.lane.b32.xlu0 %v1158_v19, %s1318_s17 }
  0xb9   : > { %v1160_v21 = vpop.eup %1159 }
  0xba   : > { %v363_v22 = vadd.f32 1.0, %v1160_v21 }
  0xbc   : > { %1161 = vrcp.f32 %v363_v22  ;;  %v375_v28 = vand.u32 2147483648, %v363_v22  ;;  %vm369_vm2 = vweird.f32 %v363_v22  ;;  %v373_v29 = vand.u32 2147483647, %v363_v22 }
  0xbe   : > { %v376_v31 = vor.u32 1.1754944e-38, %v375_v28  ;;  %vm374_vm4 = vcmp.eq.f32.partialorder %v373_v29, 8.507059e+37 }
  0xc2   : > { %v1162_v23 = vpop.eup %1161 }
  0xc3   : > { %v365_v24 = vmul.f32 %v1162_v23, %v363_v22  ;;  %vm370_vm1 = vweird.f32 %v1162_v23 }
  0xc4   : > { %vm371_vm3 = vmor %vm369_vm2, %vm370_vm1 }
  0xc5   : > { %v366_v25 = vsub.f32 1.0, %v365_v24 }
  0xc7   : > { %v367_v26 = vmul.f32 %v1162_v23, %v366_v25 }
  0xc9   : > { %v368_v27 = vadd.f32 %v1162_v23, %v367_v26 }
  0xcb   : > { %v372_v30 = vsel %vm371_vm3, %v1162_v23, %v368_v27 }
  0xcc   : > { %v377_v33 = vsel %vm374_vm4, %v376_v31, %v372_v30 }
  0xcd   : > { %v380_v35 = vmul.f32 0.0, %v377_v33 }
 0x12a   : > { %v383_v32 = vpop.permute.xlu0 %382 }
 0x12b   : > { %v385_v34 = vmul.f32 %v383_v32, %v377_v33 }
 0x12d   : > { %387 = vrot.lane.b32.xlu0 %v385_v34, %s1319_s18  ;;  %v253_v34 = vld [vmem:[%s1436_s10 + $0x18] sm:$0xff] }
 0x12e   : > { %1068 = vmatmul.msk.f32.gmra.mxu0 %vm266_vm0, %v253_v34  ;;  %v840_v34 = vld [vmem:[%s1654_s4 + $0x10] sm:$0xff] }
 0x19f   : > { %v388_v36 = vpop.permute.xlu0 %387 }
 0x1a0   : > { %v390_v37 = vadd.f32 %v388_v36, %v380_v35 }
 0x1a2   : > { %1163 = vtanh.f32 %v390_v37 }
 0x1a8   : > { %v1164_v38 = vpop.eup %1163 }
 0x1a9   : > { %393 = vrot.lane.b32.xlu1 %v1164_v38, %s1318_s17 }
 0x1ab   : > { %v317_v38 = vpop.f32.mrf.mxu0 }
 0x21b   : > { %v394_v39 = vpop.permute.xlu1 %393 }
 0x21c   : > { %v396_v40 = vmul.f32 %v394_v39, %v377_v33  ;;  %v318_v39 = vadd.f32 %v1485_v15, %v317_v38  ;;  %v838_v38 = vld [vmem:[%s1654_s4] sm:$0xff] }
 0x21e   : > { %398 = vrot.lane.b32.xlu1 %v396_v40, %s1319_s18 }
 0x290   : > { %v1494_v42 = vpop.permute.xlu1 %398 }
 0x291   : > { %1074 = vmatmul.msk.f32.vlgmr.msra.gmra.mxu2 %vm266_vm0, %v1494_v42 }
 0x292   : > { %792 = vmatpush.msra.mxu2 %v1415_v2 }
 0x294   : > { %793 = vmatpush.msra.mxu2 %v1426_v4 }
 0x296   : > { %794 = vmatpush.msra.mxu2 %v1441_v6 }
 0x298   : > { %795 = vmatpush.msra.mxu2 %v1451_v9 }
 0x314   : > { %v419_v45 = vpop.f32.mrf.mxu2 }
 0x315   : > { %v422_v46 = vadd.f32 %v419_v45, %v312_v44 }
 0x317   : > { %1165 = vtanh.f32 %v422_v46  ;;  %v1075_v48 = vmul.f32 -1.442695, %v422_v46 }
 0x319   : > { %1167 = vpow2.f32 %v1075_v48 }
 0x31d   : > { %v1166_v47 = vpop.eup %1165 }
 0x31e   : > { %445 = vrot.lane.b32.xlu2 %v1166_v47, %s1318_s17 }
 0x31f   : > { %v1168_v49 = vpop.eup %1167 }
 0x320   : > { %v426_v50 = vadd.f32 1.0, %v1168_v49 }
 0x322   : > { %1169 = vrcp.f32 %v426_v50  ;;  %v438_v56 = vand.u32 2147483648, %v426_v50  ;;  %vm432_vm6 = vweird.f32 %v426_v50  ;;  %v436_v57 = vand.u32 2147483647, %v426_v50 }
 0x324   : > { %v439_v59 = vor.u32 1.1754944e-38, %v438_v56  ;;  %vm437_vm8 = vcmp.eq.f32.partialorder %v436_v57, 8.507059e+37 }
 0x328   : > { %v1170_v51 = vpop.eup %1169 }
 0x329   : > { %v428_v52 = vmul.f32 %v1170_v51, %v426_v50  ;;  %vm433_vm5 = vweird.f32 %v1170_v51 }
 0x32a   : > { %vm434_vm7 = vmor %vm432_vm6, %vm433_vm5 }
 0x32b   : > { %v429_v53 = vsub.f32 1.0, %v428_v52 }
 0x32d   : > { %v430_v54 = vmul.f32 %v1170_v51, %v429_v53 }
 0x32f   : > { %v431_v55 = vadd.f32 %v1170_v51, %v430_v54 }
 0x331   : > { %v435_v58 = vsel %vm434_vm7, %v1170_v51, %v431_v55 }
 0x332   : > { %v440_v61 = vsel %vm437_vm8, %v439_v59, %v435_v58 }
 0x333   : > { %v443_v63 = vmul.f32 %v440_v61, %v390_v37 }
 0x378   : > { %v446_v60 = vpop.permute.xlu2 %445 }
 0x379   : > { %v448_v62 = vmul.f32 %v446_v60, %v440_v61 }
 0x37b   : > { %450 = vrot.lane.b32.xlu2 %v448_v62, %s1319_s18 }
 0x3d5   : > { %v451_v0 = vpop.permute.xlu2 %450 }
 0x3d6   : > { %v453_v1 = vadd.f32 %v451_v0, %v443_v63 }
 0x3d8   : > { %1171 = vtanh.f32 %v453_v1 }
 0x3de   : > { %v1172_v2 = vpop.eup %1171 }
 0x3df   : > { %456 = vrot.lane.b32.xlu0 %v1172_v2, %s1318_s17 }
 0x451   : > { %v457_v3 = vpop.permute.xlu0 %456 }
 0x452   : > { %v459_v4 = vmul.f32 %v457_v3, %v440_v61 }
 0x454   : > { %461 = vrot.lane.b32.xlu1 %v459_v4, %s1319_s18 }
 0x4c6   : > { %v1509_v6 = vpop.permute.xlu1 %461 }
 0x4c7   : > { %1076 = vmatmul.msk.f32.vlgmr.msra.gmra.mxu3 %vm266_vm0, %v1509_v6 }
 0x54a   : > { %v482_v9 = vpop.f32.mrf.mxu3 }
 0x54b   : > { %v485_v10 = vadd.f32 %v482_v9, %v315_v8 }
 0x54d   : > { %1173 = vtanh.f32 %v485_v10  ;;  %v1077_v14 = vmul.f32 -1.442695, %v485_v10 }
 0x54f   : > { %1175 = vpow2.f32 %v1077_v14 }
 0x553   : > { %v1174_v11 = vpop.eup %1173 }
 0x554   : > { %508 = vrot.lane.b32.xlu2 %v1174_v11, %s1318_s17 }
 0x555   : > { %v1176_v16 = vpop.eup %1175 }
 0x556   : > { %v489_v17 = vadd.f32 1.0, %v1176_v16 }
 0x558   : > { %1177 = vrcp.f32 %v489_v17  ;;  %v501_v23 = vand.u32 2147483648, %v489_v17  ;;  %vm495_vm10 = vweird.f32 %v489_v17  ;;  %v499_v24 = vand.u32 2147483647, %v489_v17 }
 0x55a   : > { %v502_v26 = vor.u32 1.1754944e-38, %v501_v23  ;;  %vm500_vm12 = vcmp.eq.f32.partialorder %v499_v24, 8.507059e+37 }
 0x55e   : > { %v1178_v18 = vpop.eup %1177 }
 0x55f   : > { %v491_v19 = vmul.f32 %v1178_v18, %v489_v17  ;;  %vm496_vm9 = vweird.f32 %v1178_v18 }
 0x560   : > { %vm497_vm11 = vmor %vm495_vm10, %vm496_vm9 }
 0x561   : > { %v492_v20 = vsub.f32 1.0, %v491_v19 }
 0x563   : > { %v493_v21 = vmul.f32 %v1178_v18, %v492_v20 }
 0x565   : > { %v494_v22 = vadd.f32 %v1178_v18, %v493_v21 }
 0x567   : > { %v498_v25 = vsel %vm497_vm11, %v1178_v18, %v494_v22 }
 0x568   : > { %v503_v28 = vsel %vm500_vm12, %v502_v26, %v498_v25 }
 0x569   : > { %v506_v30 = vmul.f32 %v503_v28, %v453_v1  ;;  %v254_v1 = vld [vmem:[%s1436_s10 + $0x20] sm:$0xff] }
 0x56a   : > { %1069 = vmatmul.msk.f32.gmra.mxu0 %vm266_vm0, %v254_v1 }
 0x5ae   : > { %v509_v27 = vpop.permute.xlu2 %508 }
 0x5af   : > { %v511_v29 = vmul.f32 %v509_v27, %v503_v28 }
 0x5b1   : > { %513 = vrot.lane.b32.xlu0 %v511_v29, %s1319_s18 }
 0x5e7   : > { %v320_v3 = vpop.f32.mrf.mxu0 }
 0x5e8   : > { %v321_v4 = vadd.f32 %v1485_v15, %v320_v3 }
 0x623   : > { %v514_v31 = vpop.permute.xlu0 %513 }
 0x624   : > { %v516_v32 = vadd.f32 %v514_v31, %v506_v30 }
 0x626   : > { %1179 = vtanh.f32 %v516_v32 }
 0x62c   : > { %v1180_v33 = vpop.eup %1179 }
 0x62d   : > { %519 = vrot.lane.b32.xlu1 %v1180_v33, %s1318_s17  ;;  %v841_v33 = vld [vmem:[%s1654_s4 + $0x18] sm:$0xff] }
 0x62e   : > { %1107 = vmatpush.msra.mxu3 %v841_v33 }
 0x630   : > { %1108 = vmatpush.msra.mxu3 %v840_v34 }
 0x69f   : > { %v520_v35 = vpop.permute.xlu1 %519 }
 0x6a0   : > { %v522_v36 = vmul.f32 %v520_v35, %v503_v28  ;;  %v255_v35 = vld [vmem:[%s1436_s10 + $0x28] sm:$0xff]  ;;  %s1273_s10 = scalar_lea.hbm %s1656_s6, 128 }
 0x6a1   : > { %1070 = vmatmul.msk.f32.gmra.mxu0 %vm266_vm0, %v255_v35 }
 0x6a2   : > { %524 = vrot.lane.b32.xlu2 %v522_v36, %s1319_s18  ;;  %v839_v36 = vld [vmem:[%s1654_s4 + $0x8] sm:$0xff] }
 0x6a3   : > { %1109 = vmatpush.msra.mxu3 %v839_v36 }
 0x6a5   : > { %1110 = vmatpush.msra.mxu3 %v838_v38 }
 0x6fc   : > { %v1520_v37 = vpop.permute.xlu2 %524 }
 0x6fd   : > { %1078 = vmatmul.msk.f32.vlgmr.msra.gmra.mxu1 %vm266_vm0, %v1520_v37 }
 0x6fe   : > { %863 = vmatpush.msra.mxu1 %v841_v33 }
 0x700   : > { %864 = vmatpush.msra.mxu1 %v840_v34 }
 0x702   : > { %865 = vmatpush.msra.mxu1 %v839_v36 }
 0x704   : > { %866 = vmatpush.msra.mxu1 %v838_v38 }
 0x77a   : > { %v545_v40 = vpop.f32.mrf.mxu1 }
 0x77b   : > { %v548_v41 = vadd.f32 %v545_v40, %v318_v39  ;;  %v323_v40 = vpop.f32.mrf.mxu0 }
 0x77d   : > { %1181 = vtanh.f32 %v548_v41  ;;  %v1079_v44 = vmul.f32 -1.442695, %v548_v41  ;;  %v324_v41 = vadd.f32 %v1485_v15, %v323_v40 }
 0x77f   : > { %1183 = vpow2.f32 %v1079_v44 }
 0x783   : > { %v1182_v43 = vpop.eup %1181 }
 0x784   : > { %571 = vrot.lane.b32.xlu0 %v1182_v43, %s1318_s17 }
 0x785   : > { %v1184_v45 = vpop.eup %1183 }
 0x786   : > { %v552_v46 = vadd.f32 1.0, %v1184_v45 }
 0x788   : > { %1185 = vrcp.f32 %v552_v46  ;;  %v564_v52 = vand.u32 2147483648, %v552_v46  ;;  %vm558_vm14 = vweird.f32 %v552_v46  ;;  %v562_v53 = vand.u32 2147483647, %v552_v46 }
 0x78a   : > { %v565_v55 = vor.u32 1.1754944e-38, %v564_v52  ;;  %vm563_vm1 = vcmp.eq.f32.partialorder %v562_v53, 8.507059e+37 }
 0x78e   : > { %v1186_v47 = vpop.eup %1185 }
 0x78f   : > { %v554_v48 = vmul.f32 %v1186_v47, %v552_v46  ;;  %vm559_vm13 = vweird.f32 %v1186_v47 }
 0x790   : > { %vm560_vm15 = vmor %vm558_vm14, %vm559_vm13 }
 0x791   : > { %v555_v49 = vsub.f32 1.0, %v554_v48 }
 0x793   : > { %v556_v50 = vmul.f32 %v1186_v47, %v555_v49 }
 0x795   : > { %v557_v51 = vadd.f32 %v1186_v47, %v556_v50 }
 0x797   : > { %v561_v54 = vsel %vm560_vm15, %v1186_v47, %v557_v51 }
 0x798   : > { %v566_v57 = vsel %vm563_vm1, %v565_v55, %v561_v54 }
 0x799   : > { %v569_v59 = vmul.f32 %v566_v57, %v516_v32 }
 0x7f6   : > { %v572_v56 = vpop.permute.xlu0 %571 }
 0x7f7   : > { %v574_v58 = vmul.f32 %v572_v56, %v566_v57 }
 0x7f9   : > { %576 = vrot.lane.b32.xlu1 %v574_v58, %s1319_s18 }
 0x86b   : > { %v577_v60 = vpop.permute.xlu1 %576 }
 0x86c   : > { %v579_v61 = vadd.f32 %v577_v60, %v569_v59 }
 0x86e   : > { %1187 = vtanh.f32 %v579_v61 }
 0x874   : > { %v1188_v62 = vpop.eup %1187 }
 0x875   : > { %582 = vrot.lane.b32.xlu2 %v1188_v62, %s1318_s17 }
 0x8cf   : > { %v583_v63 = vpop.permute.xlu2 %582 }
 0x8d0   : > { %v585_v0 = vmul.f32 %v583_v63, %v566_v57 }
 0x8d2   : > { %587 = vrot.lane.b32.xlu0 %v585_v0, %s1319_s18 }
 0x944   : > { %v1531_v2 = vpop.permute.xlu0 %587 }
 0x945   : > { %1080 = vmatmul.msk.f32.vlgmr.msrb.gmra.mxu2 %vm266_vm0, %v1531_v2 }
 0x9c8   : > { %v608_v5 = vpop.f32.mrf.mxu2 }
 0x9c9   : > { %v611_v7 = vadd.f32 %v608_v5, %v321_v4  ;;  %v327_v5 = vadd.f32 %v1485_v15, %v1478_v12 }
 0x9cb   : > { %1189 = vtanh.f32 %v611_v7  ;;  %v1081_v9 = vmul.f32 -1.442695, %v611_v7 }
 0x9cd   : > { %1191 = vpow2.f32 %v1081_v9 }
 0x9d1   : > { %v1190_v8 = vpop.eup %1189 }
 0x9d2   : > { %634 = vrot.lane.b32.xlu1 %v1190_v8, %s1318_s17 }
 0x9d3   : > { %v1192_v10 = vpop.eup %1191 }
 0x9d4   : > { %v615_v11 = vadd.f32 1.0, %v1192_v10 }
 0x9d6   : > { %1193 = vrcp.f32 %v615_v11  ;;  %v627_v20 = vand.u32 2147483648, %v615_v11  ;;  %vm621_vm3 = vweird.f32 %v615_v11  ;;  %v625_v21 = vand.u32 2147483647, %v615_v11 }
 0x9d8   : > { %v628_v23 = vor.u32 1.1754944e-38, %v627_v20  ;;  %vm626_vm5 = vcmp.eq.f32.partialorder %v625_v21, 8.507059e+37 }
 0x9dc   : > { %v1194_v14 = vpop.eup %1193 }
 0x9dd   : > { %v617_v16 = vmul.f32 %v1194_v14, %v615_v11  ;;  %vm622_vm2 = vweird.f32 %v1194_v14 }
 0x9de   : > { %vm623_vm4 = vmor %vm621_vm3, %vm622_vm2 }
 0x9df   : > { %v618_v17 = vsub.f32 1.0, %v617_v16 }
 0x9e1   : > { %v619_v18 = vmul.f32 %v1194_v14, %v618_v17 }
 0x9e3   : > { %v620_v19 = vadd.f32 %v1194_v14, %v619_v18 }
 0x9e5   : > { %v624_v22 = vsel %vm623_vm4, %v1194_v14, %v620_v19 }
 0x9e6   : > { %v629_v25 = vsel %vm626_vm5, %v628_v23, %v624_v22 }
 0x9e7   : > { %v632_v27 = vmul.f32 %v629_v25, %v579_v61 }
 0xa44   : > { %v635_v24 = vpop.permute.xlu1 %634 }
 0xa45   : > { %v637_v26 = vmul.f32 %v635_v24, %v629_v25 }
 0xa47   : > { %639 = vrot.lane.b32.xlu2 %v637_v26, %s1319_s18 }
 0xaa1   : > { %v640_v28 = vpop.permute.xlu2 %639 }
 0xaa2   : > { %v642_v29 = vadd.f32 %v640_v28, %v632_v27 }
 0xaa4   : > { %1195 = vtanh.f32 %v642_v29 }
 0xaaa   : > { %v1196_v30 = vpop.eup %1195 }
 0xaab   : > { %645 = vrot.lane.b32.xlu0 %v1196_v30, %s1318_s17  ;;  %v330_v30 = vadd.f32 %v1485_v15, %v1480_v13 }
 0xb1d   : > { %v646_v31 = vpop.permute.xlu0 %645 }
 0xb1e   : > { %v648_v32 = vmul.f32 %v646_v31, %v629_v25 }
 0xb20   : > { %650 = vrot.lane.b32.xlu1 %v648_v32, %s1319_s18 }
 0xb92   : > { %v651_v39 = vpop.permute.xlu1 %650 }
 0xb93   : > { %1082 = vmatmul.msk.f32.vlgmr.msrb.gmra.mxu3 %vm266_vm0, %v651_v39 }
 0xb9b   : > { %1092 = vmatmul.msk.f32.vlgmr.msra.gmra.mxu3 %vm266_vm0, %v651_v39 }
 0xc16   : > { %v671_v43 = vpop.f32.mrf.mxu3 }
 0xc17   : > { %v674_v44 = vadd.f32 %v671_v43, %v324_v41 }
 0xc19   : > { %1197 = vtanh.f32 %v674_v44  ;;  %v1083_v46 = vmul.f32 -1.442695, %v674_v44 }
 0xc1b   : > { %1199 = vpow2.f32 %v1083_v46 }
 0xc1f   : > { %v1198_v45 = vpop.eup %1197 }
 0xc20   : > { %697 = vrot.lane.b32.xlu2 %v1198_v45, %s1318_s17 }
 0xc21   : > { %v1200_v47 = vpop.eup %1199 }
 0xc22   : > { %v678_v48 = vadd.f32 1.0, %v1200_v47 }
 0xc24   : > { %1201 = vrcp.f32 %v678_v48  ;;  %v690_v54 = vand.u32 2147483648, %v678_v48  ;;  %vm684_vm7 = vweird.f32 %v678_v48  ;;  %v688_v55 = vand.u32 2147483647, %v678_v48 }
 0xc26   : > { %v691_v57 = vor.u32 1.1754944e-38, %v690_v54  ;;  %vm689_vm9 = vcmp.eq.f32.partialorder %v688_v55, 8.507059e+37 }
 0xc2a   : > { %v1202_v49 = vpop.eup %1201 }
 0xc2b   : > { %v680_v50 = vmul.f32 %v1202_v49, %v678_v48  ;;  %vm685_vm6 = vweird.f32 %v1202_v49 }
 0xc2c   : > { %vm686_vm8 = vmor %vm684_vm7, %vm685_vm6 }
 0xc2d   : > { %v681_v51 = vsub.f32 1.0, %v680_v50 }
 0xc2f   : > { %v682_v52 = vmul.f32 %v1202_v49, %v681_v51 }
 0xc31   : > { %v683_v53 = vadd.f32 %v1202_v49, %v682_v52  ;;  %v1586_v52 = vld [vmem:[%s1655_s5] ss:$0 sm:$0xff] }
 0xc33   : > { %v687_v56 = vsel %vm686_vm8, %v1202_v49, %v683_v53 }
 0xc34   : > { %v692_v59 = vsel %vm689_vm9, %v691_v57, %v687_v56  ;;  %v880_v56 = vpop.f32.mrf.mxu3 }
 0xc35   : > { %v695_v61 = vmul.f32 %v692_v59, %v642_v29  ;;  %v881_v57 = vadd.f32 %v1586_v52, %v880_v56 }
 0xc7a   : > { %v698_v58 = vpop.permute.xlu2 %697 }
 0xc7b   : > { %v700_v60 = vmul.f32 %v698_v58, %v692_v59 }
 0xc7d   : > { %702 = vrot.lane.b32.xlu0 %v700_v60, %s1319_s18 }
 0xcef   : > { %v703_v62 = vpop.permute.xlu0 %702 }
 0xcf0   : > { %v705_v63 = vadd.f32 %v703_v62, %v695_v61 }
 0xcf2   : > { %1203 = vtanh.f32 %v705_v63 }
 0xcf8   : > { %v1204_v0 = vpop.eup %1203 }
 0xcf9   : > { %708 = vrot.lane.b32.xlu1 %v1204_v0, %s1318_s17 }
 0xd6b   : > { %v709_v1 = vpop.permute.xlu1 %708 }
 0xd6c   : > { %v711_v3 = vmul.f32 %v709_v1, %v692_v59 }
 0xd6e   : > { %713 = vrot.lane.b32.xlu2 %v711_v3, %s1319_s18 }
 0xdc8   : > { %v714_v4 = vpop.permute.xlu2 %713 }
 0xdc9   : > { %1084 = vmatmul.msk.f32.vlgmr.msrb.gmra.mxu1 %vm266_vm0, %v714_v4  ;;  %1093 = vmatmul.msk.f32.gmra.mxu3 %vm266_vm0, %v714_v4 }
 0xdd1   : > { %1088 = vmatmul.msk.f32.vlgmr.msra.gmra.mxu1 %vm266_vm0, %v1494_v42 }
 0xdd9   : > { %1089 = vmatmul.msk.f32.gmra.mxu1 %vm266_vm0, %v1509_v6 }
 0xde1   : > { %1090 = vmatmul.msk.f32.gmra.mxu1 %vm266_vm0, %v1520_v37 }
 0xde9   : > { %1091 = vmatmul.msk.f32.gmra.mxu1 %vm266_vm0, %v1531_v2 }
 0xe46   : > { %v734_v7 = vpop.f32.mrf.mxu1 }
 0xe47   : > { %v737_v8 = vadd.f32 %v734_v7, %v327_v5 }
 0xe49   : > { %1205 = vtanh.f32 %v737_v8  ;;  %v1085_v10 = vmul.f32 -1.442695, %v737_v8 }
 0xe4b   : > { %1207 = vpow2.f32 %v1085_v10 }
 0xe4e   : > { %v868_v49 = vpop.f32.mrf.mxu1 }
 0xe4f   : > { %v1206_v9 = vpop.eup %1205  ;;  %v869_v53 = vadd.f32 %v1586_v52, %v868_v49 }
 0xe50   : > { %760 = vrot.lane.b32.xlu0 %v1206_v9, %s1318_s17 }
 0xe51   : > { %v1208_v42 = vpop.eup %1207 }
 0xe52   : > { %v741_v11 = vadd.f32 1.0, %v1208_v42 }
 0xe54   : > { %1209 = vrcp.f32 %v741_v11  ;;  %v753_v2 = vand.u32 2147483648, %v741_v11  ;;  %vm747_vm11 = vweird.f32 %v741_v11  ;;  %v751_v12 = vand.u32 2147483647, %v741_v11 }
 0xe56   : > { %v754_v19 = vor.u32 1.1754944e-38, %v753_v2  ;;  %vm752_vm13 = vcmp.eq.f32.partialorder %v751_v12, 8.507059e+37  ;;  %v871_v50 = vpop.f32.mrf.mxu1 }
 0xe57   : > { %v872_v62 = vadd.f32 %v1586_v52, %v871_v50 }
 0xe5a   : > { %v1210_v6 = vpop.eup %1209 }
 0xe5b   : > { %v743_v14 = vmul.f32 %v1210_v6, %v741_v11  ;;  %vm748_vm10 = vweird.f32 %v1210_v6 }
 0xe5c   : > { %vm749_vm12 = vmor %vm747_vm11, %vm748_vm10 }
 0xe5d   : > { %v744_v37 = vsub.f32 1.0, %v743_v14 }
 0xe5e   : > { %v874_v51 = vpop.f32.mrf.mxu1 }
 0xe5f   : > { %v745_v16 = vmul.f32 %v1210_v6, %v744_v37 }
 0xe61   : > { %v746_v17 = vadd.f32 %v1210_v6, %v745_v16 }
 0xe63   : > { %v750_v18 = vsel %vm749_vm12, %v1210_v6, %v746_v17  ;;  %v875_v6 = vadd.f32 %v1586_v52, %v874_v51 }
 0xe64   : > { %v755_v21 = vsel %vm752_vm13, %v754_v19, %v750_v18 }
 0xe65   : > { %v758_v23 = vmul.f32 %v755_v21, %v705_v63  ;;  %v883_v63 = vpop.f32.mrf.mxu3 }
 0xe66   : > { %v877_v54 = vpop.f32.mrf.mxu1  ;;  %v1594_v0 = vadd.f32 %v1586_v52, %v883_v63 }
 0xe67   : > { %v878_v55 = vadd.f32 %v1586_v52, %v877_v54 }
 0xec2   : > { %v761_v20 = vpop.permute.xlu0 %760 }
 0xec3   : > { %v763_v22 = vmul.f32 %v761_v20, %v755_v21 }
 0xec5   : > { %765 = vrot.lane.b32.xlu1 %v763_v22, %s1319_s18 }
 0xf37   : > { %v766_v24 = vpop.permute.xlu1 %765 }
 0xf38   : > { %v768_v25 = vadd.f32 %v766_v24, %v758_v23 }
 0xf3a   : > { %1211 = vtanh.f32 %v768_v25 }
 0xf40   : > { %v1212_v26 = vpop.eup %1211 }
 0xf41   : > { %771 = vrot.lane.b32.xlu2 %v1212_v26, %s1318_s17 }
 0xf9b   : > { %v772_v27 = vpop.permute.xlu2 %771 }
 0xf9c   : > { %v774_v28 = vmul.f32 %v772_v27, %v755_v21 }
 0xf9e   : > { %776 = vrot.lane.b32.xlu0 %v774_v28, %s1319_s18 }
0x1010   : > { %v777_v29 = vpop.permute.xlu0 %776 }
0x1011   : > { %1086 = vmatmul.msk.f32.vlgmr.msra.gmra.mxu2 %vm266_vm0, %v777_v29  ;;  %1094 = vmatmul.msk.f32.gmra.mxu3 %vm266_vm0, %v777_v29 }
0x1094   : > { %v797_v31 = vpop.f32.mrf.mxu2  ;;  %v886_v16 = vpop.f32.mrf.mxu3 }
0x1095   : > { %v800_v32 = vadd.f32 %v797_v31, %v330_v30  ;;  %v887_v2 = vadd.f32 %v1586_v52, %v886_v16 }
0x1097   : > { %1213 = vtanh.f32 %v800_v32  ;;  %v1087_v34 = vmul.f32 -1.442695, %v800_v32 }
0x1099   : > { %1215 = vpow2.f32 %v1087_v34 }
0x109d   : > { %v1214_v33 = vpop.eup %1213 }
0x109e   : > { %823 = vrot.lane.b32.xlu1 %v1214_v33, %s1318_s17 }
0x109f   : > { %v1216_v35 = vpop.eup %1215 }
0x10a0   : > { %v804_v36 = vadd.f32 1.0, %v1216_v35 }
0x10a2   : > { %1217 = vrcp.f32 %v804_v36  ;;  %v816_v44 = vand.u32 2147483648, %v804_v36  ;;  %vm810_vm15 = vweird.f32 %v804_v36  ;;  %v814_v13 = vand.u32 2147483647, %v804_v36 }
0x10a4   : > { %v817_v45 = vor.u32 1.1754944e-38, %v816_v44  ;;  %vm815_vm2 = vcmp.eq.f32.partialorder %v814_v13, 8.507059e+37 }
0x10a8   : > { %v1218_v38 = vpop.eup %1217 }
0x10a9   : > { %v806_v39 = vmul.f32 %v1218_v38, %v804_v36  ;;  %vm811_vm14 = vweird.f32 %v1218_v38 }
0x10aa   : > { %vm812_vm1 = vmor %vm810_vm15, %vm811_vm14 }
0x10ab   : > { %v807_v40 = vsub.f32 1.0, %v806_v39 }
0x10ad   : > { %v808_v41 = vmul.f32 %v1218_v38, %v807_v40 }
0x10af   : > { %v809_v43 = vadd.f32 %v1218_v38, %v808_v41 }
0x10b1   : > { %v813_v15 = vsel %vm812_vm1, %v1218_v38, %v809_v43 }
0x10b2   : > { %v818_v47 = vsel %vm815_vm2, %v817_v45, %v813_v15 }
0x10b3   : > { %v821_v58 = vmul.f32 %v818_v47, %v768_v25 }
0x1110   : > { %v824_v46 = vpop.permute.xlu1 %823 }
0x1111   : > { %v826_v48 = vmul.f32 %v824_v46, %v818_v47 }
0x1113   : > { %828 = vrot.lane.b32.xlu2 %v826_v48, %s1319_s18 }
0x113c   : > { %892 = vmax.xlane.f32.xlu2 %v869_v53 }
0x1144   : > { %898 = vmax.xlane.f32.xlu2 %v878_v55 }
0x114c   : > { %900 = vmax.xlane.f32.xlu2 %v881_v57 }
0x116d   : > { %v829_v59 = vpop.permute.xlu2 %828 }
0x116e   : > { %v831_v60 = vadd.f32 %v829_v59, %v821_v58 }
0x1170   : > { %1219 = vtanh.f32 %v831_v60 }
0x1176   : > { %v1220_v61 = vpop.eup %1219 }
0x1177   : > { %834 = vrot.lane.b32.xlu0 %v1220_v61, %s1318_s17  ;;  %s1102_s17 = sshll.u32 %s1378_s25, 6 }
0x1178   : > { %s992_s20 = scalar_lea.hbm %s1656_s6, %s1102_s17 }
0x1179   : > { %s995_s28 = sshll.u32 %s992_s20, 4  ;;  %s996_s28 = int_to_ptr.hbm [resolvable:$true] %s995_s28 }
0x117a   : > { %s1267_s9 = sshra.s32 %s996_s28, 4  ;;  %s1268_s9 = int_to_ptr.hbm [resolvable:$true] %s1267_s9 }
0x117b   : > { %s1269_s11 = scalar_lea.hbm %s1268_s9, 64  ;;  %p1274_p0 = scmp.lt.s32.totalorder %s1268_s9, %s1656_s6 }
0x117c   : > { %p1270_p11 = scmp.ne.s32.totalorder %s1268_s9, %s1269_s11  ;;  %p1275_p1 = scmp.lt.s32.totalorder %s1273_s10, %s1269_s11 }
0x117e   : > { %p1271_p12 = pnand %p1270_p11, %p1395_p5  ;;  %p1276_p2 = por %p1275_p1, %p1274_p0 }
0x1180   : > { %p1272_p13 = pneg %p1271_p12 }
0x1182   : > { %p1277_p3 = pnand %p1276_p2, %p1272_p13 }
0x11a1   : > { %894 = vmax.xlane.f32.xlu0 %v872_v62 }
0x11a9   : > { %902 = vmax.xlane.f32.xlu0 %v1594_v0 }
0x11af   : > { %v893_v1 = vpop.xlane.xlu2 %892 }
0x11b0   : > { %v908_v3 = vsub.f32 %v869_v53, %v893_v1 }
0x11b2   : > { %v916_v4 = vmul.f32 1.442695, %v908_v3 }
0x11b4   : > { %1221 = vpow2.f32 %v916_v4 }
0x11b7   : > { %v899_v5 = vpop.xlane.xlu2 %898 }
0x11b8   : > { %v911_v7 = vsub.f32 %v878_v55, %v899_v5 }
0x11ba   : > { %v1222_v8 = vpop.eup %1221  ;;  %v922_v9 = vmul.f32 1.442695, %v911_v7 }
0x11bb   : > { %932 = vadd.xlane.f32.xlu0 %v1222_v8 }
0x11bc   : > { %1223 = vpow2.f32 %v922_v9 }
0x11bf   : > { %v901_v12 = vpop.xlane.xlu2 %900 }
0x11c0   : > { %v912_v18 = vsub.f32 %v881_v57, %v901_v12 }
0x11c2   : > { %v1224_v10 = vpop.eup %1223  ;;  %v924_v19 = vmul.f32 1.442695, %v912_v18 }
0x11c3   : > { %938 = vadd.xlane.f32.xlu0 %v1224_v10 }
0x11e9   : > { %v835_v42 = vpop.permute.xlu0 %834 }
0x11ea   : > { %v837_v11 = vmul.f32 %v835_v42, %v818_v47 }
0x11ec   : > { %847 = vrot.lane.b32.xlu1 %v837_v11, %s1319_s18 }
0x1214   : > { %v895_v14 = vpop.xlane.xlu0 %894 }
0x1215   : > { %v909_v37 = vsub.f32 %v872_v62, %v895_v14 }
0x1216   : > { %896 = vmax.xlane.f32.xlu1 %v875_v6 }
0x1217   : > { %v918_v17 = vmul.f32 1.442695, %v909_v37 }
0x1219   : > { %1225 = vpow2.f32 %v918_v17 }
0x121a   : > { %1227 = vpow2.f32 %v924_v19 }
0x121c   : > { %v903_v21 = vpop.xlane.xlu0 %902 }
0x121d   : > { %v913_v49 = vsub.f32 %v1594_v0, %v903_v21 }
0x121e   : > { %904 = vmax.xlane.f32.xlu1 %v887_v2 }
0x121f   : > { %v1226_v20 = vpop.eup %1225  ;;  %v926_v50 = vmul.f32 1.442695, %v913_v49 }
0x1220   : > { %v1228_v22 = vpop.eup %1227 }
0x1226   : > { %934 = vadd.xlane.f32.xlu1 %v1226_v20 }
0x122e   : > { %940 = vadd.xlane.f32.xlu1 %v1228_v22  ;;  %v933_v23 = vpop.xlane.xlu0 %932 }
0x122f   : > { %1229 = vlog2.f32 %v933_v23 }
0x1235   : > { %v1230_v24 = vpop.eup %1229 }
0x1236   : > { %v949_v25 = vmul.f32 0.6931472, %v1230_v24  ;;  %v939_v26 = vpop.xlane.xlu0 %938 }
0x1237   : > { %1231 = vlog2.f32 %v939_v26 }
0x1238   : > { %v964_v27 = vsub.f32 %v908_v3, %v949_v25 }
0x123a   : > { %972 = vst [vmem:[%s1603_s16] sm:$0xff] %v964_v27 }
0x123d   : > { %v1232_v28 = vpop.eup %1231 }
0x123e   : > { %v955_v29 = vmul.f32 0.6931472, %v1232_v28 }
0x1240   : > { %v967_v30 = vsub.f32 %v911_v7, %v955_v29 }
0x1242   : > { %975 = vst [vmem:[%s1603_s16 + $0x18] sm:$0xff] %v967_v30 }
0x125e   : > { %v848_v31 = vpop.permute.xlu1 %847 }
0x125f   : > { %1095 = vmatmul.msk.f32.gmra.mxu3 %vm266_vm0, %v848_v31 }
0x1289   : > { %v897_v32 = vpop.xlane.xlu1 %896 }
0x128a   : > { %v910_v45 = vsub.f32 %v875_v6, %v897_v32 }
0x128c   : > { %v920_v46 = vmul.f32 1.442695, %v910_v45 }
0x1291   : > { %v905_v33 = vpop.xlane.xlu1 %904 }
0x1292   : > { %v914_v34 = vsub.f32 %v887_v2, %v905_v33 }
0x1294   : > { %v928_v35 = vmul.f32 1.442695, %v914_v34 }
0x1296   : > { %1233 = vpow2.f32 %v928_v35 }
0x1299   : > { %v935_v36 = vpop.xlane.xlu1 %934 }
0x129a   : > { %1235 = vlog2.f32 %v935_v36 }
0x129c   : > { %v1234_v38 = vpop.eup %1233 }
0x129d   : > { %944 = vadd.xlane.f32.xlu0 %v1234_v38 }
0x12a0   : > { %v1236_v39 = vpop.eup %1235 }
0x12a1   : > { %v951_v40 = vmul.f32 0.6931472, %v1236_v39  ;;  %v941_v41 = vpop.xlane.xlu1 %940 }
0x12a2   : > { %1237 = vlog2.f32 %v941_v41 }
0x12a3   : > { %v965_v43 = vsub.f32 %v909_v37, %v951_v40  ;;  %1239 = vpow2.f32 %v920_v46 }
0x12a4   : > { %1241 = vpow2.f32 %v926_v50 }
0x12a5   : > { %973 = vst [vmem:[%s1603_s16 + $0x8] sm:$0xff] %v965_v43 }
0x12a8   : > { %v1238_v44 = vpop.eup %1237 }
0x12a9   : > { %v957_v13 = vmul.f32 0.6931472, %v1238_v44  ;;  %v1240_v51 = vpop.eup %1239 }
0x12aa   : > { %v1242_v53 = vpop.eup %1241 }
0x12ab   : > { %v968_v15 = vsub.f32 %v912_v18, %v957_v13 }
0x12ad   : > { %976 = vst [vmem:[%s1603_s16 + $0x20] sm:$0xff] %v968_v15 }
0x12e2   : > { %v889_v47 = vpop.f32.mrf.mxu3 }
0x12e3   : > { %v890_v48 = vadd.f32 %v1586_v52, %v889_v47 }
0x12e5   : > { %906 = vmax.xlane.f32.xlu2 %v890_v48 }
0x12ed   : > { %936 = vadd.xlane.f32.xlu2 %v1240_v51 }
0x12f5   : > { %942 = vadd.xlane.f32.xlu2 %v1242_v53 }
0x1310   : > { %v945_v54 = vpop.xlane.xlu0 %944 }
0x1311   : > { %1243 = vlog2.f32 %v945_v54 }
0x1317   : > { %v1244_v55 = vpop.eup %1243 }
0x1318   : > { %v961_v56 = vmul.f32 0.6931472, %v1244_v55 }
0x131a   : > { %v970_v57 = vsub.f32 %v914_v34, %v961_v56 }
0x131c   : > { %978 = vst [vmem:[%s1603_s16 + $0x30] sm:$0xff] %v970_v57 }
0x1358   : > { %v907_v58 = vpop.xlane.xlu2 %906 }
0x1359   : > { %v915_v59 = vsub.f32 %v890_v48, %v907_v58 }
0x135b   : > { %v930_v52 = vmul.f32 1.442695, %v915_v59 }
0x135d   : > { %1245 = vpow2.f32 %v930_v52 }
0x1360   : > { %v937_v60 = vpop.xlane.xlu2 %936 }
0x1361   : > { %1247 = vlog2.f32 %v937_v60 }
0x1363   : > { %v1246_v61 = vpop.eup %1245 }
0x1364   : > { %946 = vadd.xlane.f32.xlu1 %v1246_v61 }
0x1367   : > { %v1248_v62 = vpop.eup %1247 }
0x1368   : > { %v953_v63 = vmul.f32 0.6931472, %v1248_v62  ;;  %v943_v0 = vpop.xlane.xlu2 %942 }
0x1369   : > { %1249 = vlog2.f32 %v943_v0 }
0x136a   : > { %v966_v1 = vsub.f32 %v910_v45, %v953_v63 }
0x136c   : > { %974 = vst [vmem:[%s1603_s16 + $0x10] sm:$0xff] %v966_v1 }
0x136f   : > { %v1250_v3 = vpop.eup %1249 }
0x1370   : > { %v959_v4 = vmul.f32 0.6931472, %v1250_v3 }
0x1372   : > { %v969_v5 = vsub.f32 %v913_v49, %v959_v4 }
0x1374   : > { %977 = vst [vmem:[%s1603_s16 + $0x28] sm:$0xff] %v969_v5 }
0x13d7   : > { %v947_v7 = vpop.xlane.xlu1 %946 }
0x13d8   : > { %1251 = vlog2.f32 %v947_v7 }
0x13de   : > { %v1252_v8 = vpop.eup %1251 }
0x13df   : > { %v963_v9 = vmul.f32 0.6931472, %v1252_v8 }
0x13e1   : > { %v971_v10 = vsub.f32 %v915_v59, %v963_v9 }
0x13e3   : > { %979 = vst [vmem:[%s1603_s16 + $0x38] sm:$0xff] %v971_v10 }
0x13e4   : > { %1280 = shalt.err (!%p1277_p3)
}
0x13e5   : > { %s1320_s14 = smov 128   ;;  %s1321_s16 = smov 8  }
0x13e6   : > { %1111 = dma.vmem_to_hbm [thread:$0]  (%p1395_p5), %s994_s26, 1024, %s996_s28, %s981_s29, %s1320_s14, %s1320_s14, %s1321_s16  }
0x13e7 PF: > { %p1117_p4 = scmp.ge.s32.totalorder %s1315_s24, 2  ;;  %s1010_s17 = sand.u32 1, %s1303_s21  }
0x13e8   : > { %s1011_s18 = scalar_lea.sflag [#allocation3], %s1010_s17 }
0x13e9   : > { %p1114_p7 = pnand %p1117_p4, %p1399_p6 }
0x13eb   : > { %p1115_p8 = pneg %p1114_p7 }
0x13ed   : > { %1298 = dma.done.wait (%p1115_p8), %s1011_s18, 1024  }
0x13ee   : > { %1300 = vsyncadd (%p1115_p8), %s1011_s18, 4294966272  ;;  %p16_p9 = scmp.ge.s32.totalorder %s1382_s27, 4   ;;  %s1659_s21 = smov %s1307_s22 }
0x13ef   : > { %s1660_s22 = smov %s1311_s23  ;;  %s1661_s23 = smov %s1393_s30 }
0x13f0   : > { %s1662_s24 = smov %s1382_s27  ;;  %18 = sbr.rel (!%p16_p9) target bundleno = 3 (0x3), region = 79 }
0x13f5   :  { %1017 = vsyncpa [#allocation3], 1 }
0x13f6   :  { %1019 = vsyncpa [#allocation3 + $0x1], 1 }

</bundles_post_ra>
